<compile_context>
chip_gen: v7x
topology: tpu7x:2x2x1
jax: 0.10.0
libtpu: 0.0.40
codegen_flags: <defaults>
</compile_context>

<pallas_src>
import math

import jax
import jax.numpy as jnp
from jax import lax
from jax.experimental import pallas as pl
from jax.experimental.pallas import tpu as pltpu


_NEG_LARGE = -1e30  # bias for padded vocab columns: exp() underflows to 0


def _round_up(x, m):
    return (x + m - 1) // m * m


def _generator_kernel(x_ref, w_ref, b_ref, out_ref, logits_ref):
    # x_ref:      (T, d_model)   token tile (compute dtype, e.g. bf16)
    # w_ref:      (d_model, TV)  pre-transposed weight tile (compute dtype)
    # b_ref:      (1, TV)        f32 bias tile
    # out_ref:    (T, V_pad)     log-probs; VMEM-resident across the vocab axis
    # logits_ref: (T, V_pad)     f32 scratch accumulator for the full logit row
    j = pl.program_id(1)
    tv = w_ref.shape[1]

    # x @ W on the MXU, f32 accumulation.
    part = lax.dot_general(
        x_ref[...],
        w_ref[...],
        dimension_numbers=(((1,), (0,)), ((), ())),
        preferred_element_type=jnp.float32,
    ) + b_ref[...]

    col = pl.multiple_of(j * tv, tv)
    logits_ref[:, pl.ds(col, tv)] = part

    @pl.when(j == pl.num_programs(1) - 1)
    def _():
        # Numerically stable log-softmax over the full (padded) vocab row.
        logits = logits_ref[...]
        m = jnp.max(logits, axis=-1, keepdims=True)
        shifted = logits - m
        lse = jnp.log(jnp.sum(jnp.exp(shifted), axis=-1, keepdims=True))
        out_ref[...] = (shifted - lse).astype(out_ref.dtype)


def _pick_token_tile(n_tok, block_tokens):
    """Tokens per grid step: multiple of 8; prefer an exact divisor of n_tok."""
    block_tokens = max(8, _round_up(block_tokens, 8))
    if n_tok % 8 == 0:
        for t in range(min(block_tokens, n_tok), 7, -8):
            if n_tok % t == 0:
                return t, n_tok  # no padding, no post-kernel slice copy
    t = min(_round_up(n_tok, 8), block_tokens)
    return t, _round_up(n_tok, t)


def generator_forward(x, weight, bias, *, block_tokens=256, block_vocab=512,
                      compute_dtype=jnp.bfloat16, out_dtype=None):
    """x: [B, S, d_model]; weight: [vocab, d_model]; bias: [vocab].

    Returns log_softmax(x @ weight.T + bias, axis=-1): [B, S, vocab] in
    out_dtype (defaults to x.dtype).  Matmul runs in compute_dtype (bf16 by
    default) with f32 accumulation; bias add and log-softmax are f32.
    """
    B, S, d_model = x.shape
    vocab, d_in = weight.shape
    assert d_in == d_model
    out_dtype = x.dtype if out_dtype is None else out_dtype

    n_tok = B * S

    # Vocab tiling: lane-dense (multiple of 128) tiles; pad vocab up to a
    # multiple of the tile so output stores are unmasked.
    tv = min(_round_up(block_vocab, 128), _round_up(vocab, 128))
    v_pad = _round_up(vocab, tv)
    n_vocab_tiles = v_pad // tv

    # VMEM budget from the actual chip (fallback: conservative 64 MiB).
    try:
        vmem_cap = int(pltpu.get_tpu_info().vmem_capacity_bytes)
    except Exception:
        vmem_cap = 64 * 1024 * 1024
    vmem_budget = max(vmem_cap - 8 * 1024 * 1024, 32 * 1024 * 1024)

    cb = jnp.dtype(compute_dtype).itemsize
    ob = jnp.dtype(out_dtype).itemsize

    def vmem_needed(t):
        return (2 * t * d_model * cb          # x tile, double-buffered
                + 2 * d_model * tv * cb       # weight tile, double-buffered
                + 2 * tv * 4                  # bias tile, double-buffered
                + 2 * t * v_pad * ob          # output slab, double-buffered
                + t * v_pad * 4)              # f32 logits scratch

    # Token tile: shrink while the per-step footprint would exceed the budget.
    bt = max(8, _round_up(block_tokens, 8))
    while True:
        t, n_pad = _pick_token_tile(n_tok, bt)
        if vmem_needed(t) <= vmem_budget or t <= 8:
            break
        bt = max(8, t // 2)

    # Prepare operands.
    x2 = x.reshape(n_tok, d_model)
    if n_pad != n_tok:
        x2 = jnp.pad(x2, ((0, n_pad - n_tok), (0, 0)))
    x2 = x2.astype(compute_dtype)

    wt = weight.T  # [d_model, vocab]: MXU-natural, no in-kernel transpose
    if v_pad != vocab:
        wt = jnp.pad(wt, ((0, 0), (0, v_pad - vocab)))
    wt = wt.astype(compute_dtype)

    b2 = bias.astype(jnp.float32)
    if v_pad != vocab:
        b2 = jnp.pad(b2, (0, v_pad - vocab), constant_values=_NEG_LARGE)
    b2 = b2.reshape(1, v_pad)

    vmem_limit = int(min(max(int(1.5 * vmem_needed(t)), 32 * 1024 * 1024),
                         vmem_budget))

    grid_spec = pltpu.PrefetchScalarGridSpec(
        num_scalar_prefetch=0,
        grid=(n_pad // t, n_vocab_tiles),
        in_specs=[
            pl.BlockSpec((t, d_model), lambda i, j: (i, 0)),   # token tile
            pl.BlockSpec((d_model, tv), lambda i, j: (0, j)),  # weight tile
            pl.BlockSpec((1, tv), lambda i, j: (0, j)),        # bias tile
        ],
        out_specs=pl.BlockSpec((t, v_pad), lambda i, j: (i, 0)),
        scratch_shapes=[pltpu.VMEM((t, v_pad), jnp.float32)],
    )

    out_flat = pl.pallas_call(
        _generator_kernel,
        out_shape=jax.ShapeDtypeStruct((n_pad, v_pad), out_dtype),
        grid_spec=grid_spec,
        compiler_params=pltpu.CompilerParams(
            dimension_semantics=("parallel", "arbitrary"),
            vmem_limit_bytes=vmem_limit,
        ),
    )(x2, wt, b2)

    if n_pad != n_tok or v_pad != vocab:
        out_flat = out_flat[:n_tok, :vocab]
    return out_flat.reshape(B, S, vocab)


if __name__ == "__main__":
    B, S = 2, 8
    d_model, vocab = 32, 64

    key = jax.random.PRNGKey(0)
    k_x, k_w, k_b = jax.random.split(key, 3)

    x = jax.random.normal(k_x, (B, S, d_model), dtype=jnp.float32)
    # nn.Linear(d_model, vocab)-style parameters (uniform +-1/sqrt(d_model)).
    bound = 1.0 / math.sqrt(d_model)
    weight = jax.random.uniform(k_w, (vocab, d_model), jnp.float32, -bound, bound)
    bias = jax.random.uniform(k_b, (vocab,), jnp.float32, -bound, bound)

    out = generator_forward(x, weight, bias)
    out = jax.block_until_ready(out)
    assert out.shape == (B, S, vocab)

    # Reference with matching precision (bf16 matmul, f32 accumulate + softmax).
    ref_logits = jnp.einsum(
        "bsd,dv->bsv",
        x.astype(jnp.bfloat16),
        weight.T.astype(jnp.bfloat16),
        preferred_element_type=jnp.float32,
    ) + bias
    ref = jax.nn.log_softmax(ref_logits, axis=-1)
    err = float(jnp.max(jnp.abs(out - ref)))
    assert jnp.allclose(out, ref, atol=1e-3, rtol=1e-3), err

    # Loose sanity check vs the full-f32 PyTorch-equivalent math.
    ref32 = jax.nn.log_softmax(jnp.einsum("bsd,vd->bsv", x, weight) + bias, axis=-1)
    err32 = float(jnp.max(jnp.abs(out - ref32)))
    assert jnp.allclose(out, ref32, atol=5e-2, rtol=5e-2), err32

    print("KERNEL_OK")
</pallas_src>

<mosaic_0001>
module attributes {stable_mosaic.version = 11 : i64} {
  func.func @_generator_kernel(%arg0: i32, %arg1: i32, %arg2: memref<16x32xbf16, #tpu.memory_space<vmem>>, %arg3: memref<32x128xbf16, #tpu.memory_space<vmem>>, %arg4: memref<1x128xf32, #tpu.memory_space<vmem>>, %arg5: memref<16x128xf32, #tpu.memory_space<vmem>>, %arg6: memref<16x128xf32, #tpu.memory_space<vmem>>) attributes {dimension_semantics = [#tpu.dimension_semantics<parallel>, #tpu.dimension_semantics<arbitrary>], iteration_bounds = array<i64: 1, 1>, scalar_prefetch = 0 : i64, scratch_operands = 1 : i64, tpu.core_type = #tpu.core_type<tc>, window_params = [{transform_indices = @transform_0, window_bounds = array<i64: 16, 32>}, {transform_indices = @transform_1, window_bounds = array<i64: 32, 128>}, {transform_indices = @transform_2, window_bounds = array<i64: 1, 128>}, {transform_indices = @transform_3, window_bounds = array<i64: 16, 128>}]} {
    %c0 = arith.constant 0 : index
    %c0_0 = arith.constant 0 : index
    %0 = vector.load %arg2[%c0, %c0_0] : memref<16x32xbf16, #tpu.memory_space<vmem>>, vector<16x32xbf16>
    %c0_1 = arith.constant 0 : index
    %c0_2 = arith.constant 0 : index
    %1 = vector.load %arg3[%c0_1, %c0_2] : memref<32x128xbf16, #tpu.memory_space<vmem>>, vector<32x128xbf16>
    %cst = arith.constant dense<0.000000e+00> : vector<16x128xf32>
    %2 = tpu.matmul %0, %1, %cst {dimension_numbers = #tpu.dot_dimension_numbers<[1], [0], [0], [1], [0, 0, 1, 1], [], []>} : vector<16x32xbf16>, vector<32x128xbf16>, vector<16x128xf32> -> vector<16x128xf32>
    %c0_3 = arith.constant 0 : index
    %c0_4 = arith.constant 0 : index
    %3 = vector.load %arg4[%c0_3, %c0_4] : memref<1x128xf32, #tpu.memory_space<vmem>>, vector<1x128xf32>
    %4 = vector.broadcast %3 : vector<1x128xf32> to vector<16x128xf32>
    %5 = arith.addf %2, %4 : vector<16x128xf32>
    %c128_i32 = arith.constant 128 : i32
    %6 = arith.muli %arg1, %c128_i32 : i32
    %7 = tpu.assume_multiple %6, 128 : i32
    %c0_5 = arith.constant 0 : index
    %8 = arith.index_cast %7 : i32 to index
    %9 = vector.load %arg6[%c0_5, %8] : memref<16x128xf32, #tpu.memory_space<vmem>>, vector<16x128xf32>
    tpu.vector_store %arg6[%c0_5, %8], %5 {strides = array<i32>} : memref<16x128xf32, #tpu.memory_space<vmem>>, vector<16x128xf32>,
    %c0_i32 = arith.constant 0 : i32
    %10 = arith.cmpi eq, %arg1, %c0_i32 : i32
    %11 = arith.extui %10 : i1 to i32
    %c0_i32_6 = arith.constant 0 : i32
    %12 = arith.cmpi ne, %11, %c0_i32_6 : i32
    scf.if %12 {
      %c0_7 = arith.constant 0 : index
      %c0_8 = arith.constant 0 : index
      %13 = vector.load %arg6[%c0_7, %c0_8] : memref<16x128xf32, #tpu.memory_space<vmem>>, vector<16x128xf32>
      %cst_9 = arith.constant dense<0xFF800000> : vector<16xf32>
      %14 = vector.multi_reduction <maximumf>, %13, %cst_9 [1] : vector<16x128xf32> to vector<16xf32>
      %15 = vector.shape_cast %14 : vector<16xf32> to vector<16x1xf32>
      %16 = vector.broadcast %15 : vector<16x1xf32> to vector<16x128xf32>
      %17 = arith.subf %13, %16 : vector<16x128xf32>
      %18 = math.exp %17 : vector<16x128xf32>
      %cst_10 = arith.constant dense<0.000000e+00> : vector<16xf32>
      %19 = vector.multi_reduction <add>, %18, %cst_10 [1] : vector<16x128xf32> to vector<16xf32>
      %20 = vector.shape_cast %19 : vector<16xf32> to vector<16x1xf32>
      %21 = math.log %20 : vector<16x1xf32>
      %22 = vector.broadcast %21 : vector<16x1xf32> to vector<16x128xf32>
      %23 = arith.subf %17, %22 : vector<16x128xf32>
      %c0_11 = arith.constant 0 : index
      %c0_12 = arith.constant 0 : index
      %24 = vector.load %arg5[%c0_11, %c0_12] : memref<16x128xf32, #tpu.memory_space<vmem>>, vector<16x128xf32>
      tpu.vector_store %arg5[%c0_11, %c0_12], %23 {strides = array<i32>} : memref<16x128xf32, #tpu.memory_space<vmem>>, vector<16x128xf32>,
    } else {
    }
    return
  }
  func.func @transform_0(%arg0: i32, %arg1: i32) -> (i32, i32) {
    %c0_i32 = arith.constant 0 : i32
    %c0_i32_0 = arith.constant 0 : i32
    return %arg0, %c0_i32 : i32, i32
  }
  func.func @transform_1(%arg0: i32, %arg1: i32) -> (i32, i32) {
    %c0_i32 = arith.constant 0 : i32
    %c0_i32_0 = arith.constant 0 : i32
    return %c0_i32, %arg1 : i32, i32
  }
  func.func @transform_2(%arg0: i32, %arg1: i32) -> (i32, i32) {
    %c0_i32 = arith.constant 0 : i32
    %c0_i32_0 = arith.constant 0 : i32
    return %c0_i32, %arg1 : i32, i32
  }
  func.func @transform_3(%arg0: i32, %arg1: i32) -> (i32, i32) {
    %c0_i32 = arith.constant 0 : i32
    %c0_i32_0 = arith.constant 0 : i32
    return %arg0, %c0_i32 : i32, i32
  }
}

</mosaic_0001>

<bundles_post_ra>
// kernel: tpu_custom_call.1
= control target key start
LH: loop header
LB: loop body
LE: loop exit
PB: predicated region body
PF: predicated region fallthrough
CT: control target
= control target key end

     0   :  { %8 = vsyncpa [#allocation4], 0  ;;  %s348_s0 = inlined_call_operand.hbm [shape: bf16[16,32], index: 0, kind: input, shape index: {}]   ;;  %s349_s1 = inlined_call_operand.hbm [shape: bf16[32,128], index: 1, kind: input, shape index: {}]   ;;  %s350_s2 = inlined_call_operand.vmem [shape: f32[1,128], index: 2, kind: input, shape index: {}]   ;;  %s351_s3 = inlined_call_operand.hbm [shape: f32[16,128], index: 3, kind: output, shape index: {}]  }
   0x1   :  { %9 = vsyncpa [#allocation7], 0 }
   0x2   :  { %10 = vsyncpa [#allocation5], 0  ;;  %s280_s12 = smov [#allocation3]   ;;  %s208_s16 = scalar_lea.hbm %s348_s0, 128 }
   0x3   :  { %s16_s13 = sshll.u32 %s280_s12, 4  ;;  %p209_p0 = scmp.ne.s32.totalorder %s348_s0, %s208_s16  ;;  %s17_s13 = int_to_ptr.vmem [resolvable:$true] %s16_s13 }
   0x4   :  { %p212_p1 = scmp.lt.u32.totalorder %s208_s16, %s348_s0 }
   0x6   :  { %p214_p2 = pnand %p212_p1, %p209_p0 }
   0x8   :  { %217 = shalt.err (!%p214_p2)
}
   0x9   :  { %s218_s21 = scalar_lea.vmem %s17_s13, 128  ;;  %p223_p4 = scmp.lt.s32.totalorder %s17_s13, %s17_s13 }
   0xa   :  { %p219_p3 = scmp.ne.s32.totalorder %s17_s13, %s218_s21  ;;  %p224_p5 = scmp.lt.s32.totalorder %s218_s21, %s218_s21 }
   0xc   :  { %p225_p6 = por %p224_p5, %p223_p4 }
   0xe   :  { %p226_p7 = pnand %p225_p6, %p219_p3 }
  0x10   :  { %229 = shalt.err (!%p226_p7)
}
  0x11   :  { %s281_s22 = smov 64   ;;  %s282_s23 = smov 4  }
  0x12   :  { %22 = dma.hbm_to_vmem [thread:$0]  %s348_s0, 128, %s17_s13, [#allocation4], %s281_s22, %s281_s22, %s282_s23  }
  0x13   :  { %s283_s26 = smov [#allocation6]   ;;  %s230_s30 = scalar_lea.hbm %s349_s1, 256 }
  0x14   :  { %s28_s27 = sshll.u32 %s283_s26, 4  ;;  %p231_p8 = scmp.ne.s32.totalorder %s349_s1, %s230_s30  ;;  %s29_s27 = int_to_ptr.vmem [resolvable:$true] %s28_s27 }
  0x15   :  { %p234_p9 = scmp.lt.u32.totalorder %s230_s30, %s349_s1 }
  0x17   :  { %p236_p10 = pnand %p234_p9, %p231_p8 }
  0x19   :  { %239 = shalt.err (!%p236_p10)
}
  0x1a   :  { %s240_s8 = scalar_lea.vmem %s29_s27, 256  ;;  %p245_p12 = scmp.lt.s32.totalorder %s29_s27, %s29_s27 }
  0x1b   :  { %p241_p11 = scmp.ne.s32.totalorder %s29_s27, %s240_s8  ;;  %p246_p13 = scmp.lt.s32.totalorder %s240_s8, %s240_s8 }
  0x1d   :  { %p247_p0 = por %p246_p13, %p245_p12 }
  0x1f   :  { %p248_p1 = pnand %p247_p0, %p241_p11 }
  0x21   :  { %251 = shalt.err (!%p248_p1)
}
  0x22   :  { %34 = dma.hbm_to_vmem [thread:$0]  %s349_s1, 256, %s29_s27, [#allocation7], %s281_s22, %s281_s22, %s282_s23  }
  0x23   :  { %274 = dma.done.wait [#allocation4], 128  }
  0x24   :  { %275 = vsyncadd [#allocation4], 4294967168 }
  0x25   :  { %276 = dma.done.wait [#allocation7], 256  }
  0x26   :  { %277 = vsyncadd [#allocation7], 4294967040  ;;  %v284_v0 = vmov 0.0   ;;  %vm285_vm0 = vmmov 0   ;;  %v197_v1 = vld [vmem:[#allocation6] sm:$0xff]   ;;  %v198_v2 = vld [vmem:[#allocation6 + $0x8] sm:$0xff]  }
  0x27   :  { %180 = vmatprep.subr.bf16.mxu0 %v284_v0  ;;  %184 = vmatprep.mubr.msk.bf16.mxu0 %vm285_vm0, %v284_v0  ;;  %v199_v3 = vld [vmem:[#allocation3] sm:$0xff]   ;;  %vm74_vm1 = vcmask 261120   ;;  %s286_s1 = smov [#allocation8]  }
  0x28   :  { %181 = vmatpush3.bf16.msra.mxu0 %v197_v1  ;;  %v172_v4 = vld [vmem:[%s350_s2] ss:$0 sm:$0xff]  ;;  %s158_s2 = sshll.u32 %s286_s1, 4  ;;  %s159_s2 = int_to_ptr.vmem [resolvable:$true] %s158_s2 }
  0x29   :  { %182 = vmatprep.subr.bf16.mxu0 %v284_v0  ;;  %s252_s12 = scalar_lea.vmem %s159_s2, 256  ;;  %p257_p3 = scmp.lt.s32.totalorder %s159_s2, %s159_s2 }
  0x2a   :  { %p253_p2 = scmp.ne.s32.totalorder %s159_s2, %s252_s12  ;;  %p258_p4 = scmp.lt.s32.totalorder %s252_s12, %s252_s12 }
  0x2c   :  { %183 = vmatpush3.bf16.msra.mxu0 %v198_v2  ;;  %p259_p5 = por %p258_p4, %p257_p3 }
  0x2e   :  { %p260_p6 = pnand %p259_p5, %p253_p2 }
  0x2f   :  { %185 = vmatmul.mubr.msk.bf16.vlgmr.msra.gmra.mrb[0].mxu0 %vm74_vm1, %v199_v3 }
 0x102   :  { %v112_v5 = vpop.f32.mrb[0].mxu0 }
 0x103   :  { %v113_v6 = vadd.f32 %v172_v4, %v112_v5  ;;  %v186_v7 = vpop.f32.mrb[1].mxu0 }
 0x104   :  { %v115_v8 = vpop.f32.mrb[2].mxu0 }
 0x105   :  { %131 = vmax.xlane.f32.xlu0 %v113_v6  ;;  %v187_v9 = vpop.f32.mrb[3].mxu0  ;;  %v116_v10 = vadd.f32 %v172_v4, %v115_v8 }
 0x109   :  { %133 = vmax.xlane.f32.xlu0 %v116_v10 }
 0x192   :  { %v132_v11 = vpop.xlane.xlu0 %131 }
 0x193   :  { %v135_v12 = vsub.f32 %v113_v6, %v132_v11 }
 0x195   :  { %v137_v13 = vmul.f32 1.442695, %v135_v12 }
 0x196   :  { %v134_v14 = vpop.xlane.xlu0 %133 }
 0x197   :  { %v136_v15 = vsub.f32 %v116_v10, %v134_v14  ;;  %200 = vpow2.f32 %v137_v13 }
 0x199   :  { %v139_v16 = vmul.f32 1.442695, %v136_v15 }
 0x19b   :  { %202 = vpow2.f32 %v139_v16 }
 0x1a1   :  { %v201_v17 = vpop.eup %200 }
 0x1a2   :  { %141 = vadd.xlane.f32.xlu1 %v201_v17 }
 0x1a5   :  { %v203_v18 = vpop.eup %202 }
 0x1a6   :  { %143 = vadd.xlane.f32.xlu1 %v203_v18 }
 0x22f   :  { %v142_v19 = vpop.xlane.xlu1 %141 }
 0x230   :  { %204 = vlog2.f32 %v142_v19 }
 0x233   :  { %v144_v20 = vpop.xlane.xlu1 %143 }
 0x234   :  { %206 = vlog2.f32 %v144_v20 }
 0x23a   :  { %v205_v21 = vpop.eup %204 }
 0x23b   :  { %v146_v22 = vmul.f32 0.6931472, %v205_v21 }
 0x23d   :  { %v149_v23 = vsub.f32 %v135_v12, %v146_v22 }
 0x23e   :  { %v207_v24 = vpop.eup %206 }
 0x23f   :  { %151 = vst [vmem:[#allocation8] sm:$0xff] %v149_v23  ;;  %v148_v25 = vmul.f32 0.6931472, %v207_v24 }
 0x241   :  { %v150_v26 = vsub.f32 %v136_v15, %v148_v25 }
 0x243   :  { %152 = vst [vmem:[#allocation8 + $0x8] sm:$0xff] %v150_v26 }
 0x244   :  { %263 = shalt.err (!%p260_p6)
}
 0x245   :  { %s264_s15 = scalar_lea.hbm %s351_s3, 256 }
 0x246   :  { %p265_p7 = scmp.ne.s32.totalorder %s351_s3, %s264_s15  ;;  %p268_p8 = scmp.lt.u32.totalorder %s264_s15, %s351_s3 }
 0x248   :  { %p270_p9 = pnand %p268_p8, %p265_p7 }
 0x24a   :  { %273 = shalt.err (!%p270_p9)
}
 0x24b   :  { %s287_s20 = smov 128   ;;  %s288_s21 = smov 8  }
 0x24c   :  { %164 = dma.vmem_to_hbm [thread:$0]  %s159_s2, 256, %s351_s3, [#allocation5], %s287_s20, %s287_s20, %s288_s21  }
 0x24d   :  { %278 = dma.done.wait [#allocation5], 256  }
 0x24e   :  { %279 = vsyncadd [#allocation5], 4294967040 }
 0x24f   :  { %168 = vsyncpa [#allocation4], 1 }
 0x250   :  { %169 = vsyncpa [#allocation7], 1 }
 0x251   :  { %170 = vsyncpa [#allocation5], 1 }

</bundles_post_ra>
